<compile_context>
chip_gen: v7x
topology: tpu7x:2x2x1
jax: 0.10.0
libtpu: 0.0.40
codegen_flags: <defaults>
</compile_context>

<pallas_src>
import functools

import jax
import jax.numpy as jnp
from jax.experimental import pallas as pl
from jax.experimental.pallas import tpu as pltpu


def dqn_kernel(x_ref, w1_ref, b1_ref, w2_ref, b2_ref, w3_ref, b3_ref, o_ref):
    # x arrives at native feature width in f32; cast to bf16 in-register for MXU.
    x = x_ref[...].astype(w1_ref.dtype)
    # fc1 + relu (bf16 matmul inputs, f32 accumulate, f32 elementwise)
    h1 = jnp.dot(x, w1_ref[...], preferred_element_type=jnp.float32)
    h1 = jnp.maximum(h1 + b1_ref[...], 0.0)
    # fc2 + relu
    h2 = jnp.dot(h1.astype(w2_ref.dtype), w2_ref[...],
                 preferred_element_type=jnp.float32)
    h2 = jnp.maximum(h2 + b2_ref[...], 0.0)
    # fc3 (no activation), native-width f32 store
    out = jnp.dot(h2.astype(w3_ref.dtype), w3_ref[...],
                  preferred_element_type=jnp.float32)
    o_ref[...] = (out + b3_ref[...]).astype(o_ref.dtype)


def _round_up(x, m):
    return ((x + m - 1) // m) * m


def prepare_params(params):
    """One-time weight preparation, hoisted out of the per-call path.

    Casts matmul weights to bf16 (MXU inputs) and keeps biases in f32
    (elementwise path). Call once before the training/inference loop.
    """
    w1, b1, w2, b2, w3, b3 = params
    return (w1.astype(jnp.bfloat16), b1.astype(jnp.float32),
            w2.astype(jnp.bfloat16), b2.astype(jnp.float32),
            w3.astype(jnp.bfloat16), b3.astype(jnp.float32))


def _pick_batch_tile(b8):
    # Aim for >=4 grid steps (>=2 per TensorCore on v7x under "parallel") so
    # activation DMA of tile i+1 overlaps compute of tile i, while capping the
    # tile at 1024 rows so the f32 (tb,128) intermediates stay tiny in VMEM.
    tb = _round_up(max(8, pl.cdiv(b8, 4)), 8)
    return min(tb, 1024)


@jax.jit
def dqn_forward(x, params):
    """x: (B, input_dim) f32. params: output of prepare_params().

    Returns (B, output_dim) f32.
    """
    w1, b1, w2, b2, w3, b3 = params
    B, in_dim = x.shape
    hidden = w1.shape[1]
    out_dim = w3.shape[1]

    tb = _pick_batch_tile(_round_up(B, 8))
    b_pad = _round_up(B, tb)
    # Only the batch axis is ever padded (rows B..b_pad are garbage after
    # bias+ReLU and are sliced off below).
    x_p = x if b_pad == B else jnp.pad(x, ((0, b_pad - B), (0, 0)))

    flops = 2 * b_pad * (in_dim * hidden + hidden * hidden + hidden * out_dim)
    bytes_accessed = (
        x_p.size * x_p.dtype.itemsize                      # activations in
        + 2 * (w1.size + w2.size + w3.size)                 # bf16 weights
        + 4 * (b1.size + b2.size + b3.size)                 # f32 biases
        + 4 * b_pad * out_dim)                              # f32 output

    out = pl.pallas_call(
        dqn_kernel,
        out_shape=jax.ShapeDtypeStruct((b_pad, out_dim), jnp.float32),
        grid_spec=pltpu.PrefetchScalarGridSpec(
            num_scalar_prefetch=0,
            grid=(b_pad // tb,),
            in_specs=[
                # activations: tiled along the batch grid, native feature width
                pl.BlockSpec((tb, in_dim), lambda i: (i, 0)),
                # weights / biases: constant index_map -> stay VMEM-resident
                pl.BlockSpec((in_dim, hidden), lambda i: (0, 0)),
                pl.BlockSpec((1, hidden), lambda i: (0, 0)),
                pl.BlockSpec((hidden, hidden), lambda i: (0, 0)),
                pl.BlockSpec((1, hidden), lambda i: (0, 0)),
                pl.BlockSpec((hidden, out_dim), lambda i: (0, 0)),
                pl.BlockSpec((1, out_dim), lambda i: (0, 0)),
            ],
            out_specs=pl.BlockSpec((tb, out_dim), lambda i: (i, 0)),
        ),
        compiler_params=pltpu.CompilerParams(
            dimension_semantics=("parallel",)),  # batch tiles split over v7x's 2 TCs
        cost_estimate=pl.CostEstimate(
            flops=flops, transcendentals=0, bytes_accessed=bytes_accessed),
    )(x_p, w1, b1, w2, b2, w3, b3)

    return out if b_pad == B else out[:B]


def init_params(key, input_dim, hidden, output_dim):
    # Deterministic init mimicking PyTorch's uniform(-1/sqrt(fan_in), 1/sqrt(fan_in)).
    ks = jax.random.split(key, 6)

    def lin(kw, kb, fan_in, fan_out):
        bound = 1.0 / jnp.sqrt(fan_in)
        w = jax.random.uniform(kw, (fan_in, fan_out), jnp.float32, -bound, bound)
        b = jax.random.uniform(kb, (1, fan_out), jnp.float32, -bound, bound)
        return w, b

    w1, b1 = lin(ks[0], ks[1], input_dim, hidden)
    w2, b2 = lin(ks[2], ks[3], hidden, hidden)
    w3, b3 = lin(ks[4], ks[5], input_dim if False else hidden, output_dim)
    return (w1, b1, w2, b2, w3, b3)


def dqn_reference(x, params):
    # Same numerics as the kernel: bf16 matmul inputs, f32 accumulate/elementwise.
    w1, b1, w2, b2, w3, b3 = params
    cdt = jnp.bfloat16
    h = jnp.dot(x.astype(cdt), w1.astype(cdt),
                preferred_element_type=jnp.float32) + b1
    h = jnp.maximum(h, 0.0)
    h = jnp.dot(h.astype(cdt), w2.astype(cdt),
                preferred_element_type=jnp.float32) + b2
    h = jnp.maximum(h, 0.0)
    return jnp.dot(h.astype(cdt), w3.astype(cdt),
                   preferred_element_type=jnp.float32) + b3


if __name__ == "__main__":
    # highway-env: observation_space.shape is typically (5, 5) -> input_dim = 25,
    # action_space.n = 5. A small replay mini-batch of 256 flattened states
    # (4 grid steps at tb=64) so batch tiling / weight residency is exercised.
    B, INPUT_DIM, HIDDEN, OUTPUT_DIM = 256, 25, 128, 5

    key = jax.random.PRNGKey(0)
    kx, kp = jax.random.split(key)
    x = jax.random.normal(kx, (B, INPUT_DIM), dtype=jnp.float32)
    params = init_params(kp, INPUT_DIM, HIDDEN, OUTPUT_DIM)

    # One-time weight prep (hoisted out of the per-call path).
    prepared = prepare_params(params)

    out = dqn_forward(x, prepared)
    out = jax.block_until_ready(out)

    ref = dqn_reference(x, params)
    assert out.shape == (B, OUTPUT_DIM)
    assert jnp.allclose(out, ref, atol=2e-2, rtol=2e-2), (
        float(jnp.max(jnp.abs(out - ref))))

    print("KERNEL_OK")
</pallas_src>

<mosaic_0001>
module attributes {stable_mosaic.version = 11 : i64} {
  func.func @dqn_kernel(%arg0: i32, %arg1: memref<64x25xf32, #tpu.memory_space<vmem>>, %arg2: memref<25x128xbf16, #tpu.memory_space<vmem>>, %arg3: memref<1x128xf32, #tpu.memory_space<vmem>>, %arg4: memref<128x128xbf16, #tpu.memory_space<vmem>>, %arg5: memref<1x128xf32, #tpu.memory_space<vmem>>, %arg6: memref<128x5xbf16, #tpu.memory_space<vmem>>, %arg7: memref<1x5xf32, #tpu.memory_space<vmem>>, %arg8: memref<64x5xf32, #tpu.memory_space<vmem>>) attributes {dimension_semantics = [#tpu.dimension_semantics<parallel>], iteration_bounds = array<i64: 4>, scalar_prefetch = 0 : i64, scratch_operands = 0 : i64, tpu.core_type = #tpu.core_type<tc>, window_params = [{transform_indices = @transform_0, window_bounds = array<i64: 64, 25>}, {pipeline_mode = #tpu.pipeline_mode<synchronous>, transform_indices = @transform_1, window_bounds = array<i64: 25, 128>}, {pipeline_mode = #tpu.pipeline_mode<synchronous>, transform_indices = @transform_2, window_bounds = array<i64: 1, 128>}, {pipeline_mode = #tpu.pipeline_mode<synchronous>, transform_indices = @transform_3, window_bounds = array<i64: 128, 128>}, {pipeline_mode = #tpu.pipeline_mode<synchronous>, transform_indices = @transform_4, window_bounds = array<i64: 1, 128>}, {pipeline_mode = #tpu.pipeline_mode<synchronous>, transform_indices = @transform_5, window_bounds = array<i64: 128, 5>}, {pipeline_mode = #tpu.pipeline_mode<synchronous>, transform_indices = @transform_6, window_bounds = array<i64: 1, 5>}, {transform_indices = @transform_7, window_bounds = array<i64: 64, 5>}]} {
    %c0 = arith.constant 0 : index
    %c0_0 = arith.constant 0 : index
    %0 = vector.load %arg1[%c0, %c0_0] : memref<64x25xf32, #tpu.memory_space<vmem>>, vector<64x25xf32>
    %1 = arith.truncf %0 : vector<64x25xf32> to vector<64x25xbf16>
    %c0_1 = arith.constant 0 : index
    %c0_2 = arith.constant 0 : index
    %2 = vector.load %arg2[%c0_1, %c0_2] : memref<25x128xbf16, #tpu.memory_space<vmem>>, vector<25x128xbf16>
    %cst = arith.constant dense<0.000000e+00> : vector<64x128xf32>
    %3 = tpu.matmul %1, %2, %cst {dimension_numbers = #tpu.dot_dimension_numbers<[1], [0], [0], [1], [0, 0, 1, 1], [], []>} : vector<64x25xbf16>, vector<25x128xbf16>, vector<64x128xf32> -> vector<64x128xf32>
    %c0_3 = arith.constant 0 : index
    %c0_4 = arith.constant 0 : index
    %4 = vector.load %arg3[%c0_3, %c0_4] : memref<1x128xf32, #tpu.memory_space<vmem>>, vector<1x128xf32>
    %5 = vector.broadcast %4 : vector<1x128xf32> to vector<64x128xf32>
    %6 = arith.addf %3, %5 : vector<64x128xf32>
    %cst_5 = arith.constant 0.000000e+00 : f32
    %7 = vector.broadcast %cst_5 : f32 to vector<64x128xf32>
    %8 = arith.maximumf %6, %7 : vector<64x128xf32>
    %9 = arith.truncf %8 : vector<64x128xf32> to vector<64x128xbf16>
    %c0_6 = arith.constant 0 : index
    %c0_7 = arith.constant 0 : index
    %10 = vector.load %arg4[%c0_6, %c0_7] : memref<128x128xbf16, #tpu.memory_space<vmem>>, vector<128x128xbf16>
    %cst_8 = arith.constant dense<0.000000e+00> : vector<64x128xf32>
    %11 = tpu.matmul %9, %10, %cst_8 {dimension_numbers = #tpu.dot_dimension_numbers<[1], [0], [0], [1], [0, 0, 1, 1], [], []>} : vector<64x128xbf16>, vector<128x128xbf16>, vector<64x128xf32> -> vector<64x128xf32>
    %c0_9 = arith.constant 0 : index
    %c0_10 = arith.constant 0 : index
    %12 = vector.load %arg5[%c0_9, %c0_10] : memref<1x128xf32, #tpu.memory_space<vmem>>, vector<1x128xf32>
    %13 = vector.broadcast %12 : vector<1x128xf32> to vector<64x128xf32>
    %14 = arith.addf %11, %13 : vector<64x128xf32>
    %cst_11 = arith.constant 0.000000e+00 : f32
    %15 = vector.broadcast %cst_11 : f32 to vector<64x128xf32>
    %16 = arith.maximumf %14, %15 : vector<64x128xf32>
    %17 = arith.truncf %16 : vector<64x128xf32> to vector<64x128xbf16>
    %c0_12 = arith.constant 0 : index
    %c0_13 = arith.constant 0 : index
    %18 = vector.load %arg6[%c0_12, %c0_13] : memref<128x5xbf16, #tpu.memory_space<vmem>>, vector<128x5xbf16>
    %cst_14 = arith.constant dense<0.000000e+00> : vector<64x5xf32>
    %19 = tpu.matmul %17, %18, %cst_14 {dimension_numbers = #tpu.dot_dimension_numbers<[1], [0], [0], [1], [0, 0, 1, 1], [], []>} : vector<64x128xbf16>, vector<128x5xbf16>, vector<64x5xf32> -> vector<64x5xf32>
    %c0_15 = arith.constant 0 : index
    %c0_16 = arith.constant 0 : index
    %20 = vector.load %arg7[%c0_15, %c0_16] : memref<1x5xf32, #tpu.memory_space<vmem>>, vector<1x5xf32>
    %21 = vector.broadcast %20 : vector<1x5xf32> to vector<64x5xf32>
    %22 = arith.addf %19, %21 : vector<64x5xf32>
    %c0_17 = arith.constant 0 : index
    %c0_18 = arith.constant 0 : index
    %23 = vector.load %arg8[%c0_17, %c0_18] : memref<64x5xf32, #tpu.memory_space<vmem>>, vector<64x5xf32>
    tpu.vector_store %arg8[%c0_17, %c0_18], %22 {strides = array<i32>} : memref<64x5xf32, #tpu.memory_space<vmem>>, vector<64x5xf32>,
    return
  }
  func.func @transform_0(%arg0: i32) -> (i32, i32) {
    %c0_i32 = arith.constant 0 : i32
    %c0_i32_0 = arith.constant 0 : i32
    return %arg0, %c0_i32 : i32, i32
  }
  func.func @transform_1(%arg0: i32) -> (i32, i32) {
    %c0_i32 = arith.constant 0 : i32
    %c0_i32_0 = arith.constant 0 : i32
    %c0_i32_1 = arith.constant 0 : i32
    return %c0_i32, %c0_i32_0 : i32, i32
  }
  func.func @transform_2(%arg0: i32) -> (i32, i32) {
    %c0_i32 = arith.constant 0 : i32
    %c0_i32_0 = arith.constant 0 : i32
    %c0_i32_1 = arith.constant 0 : i32
    return %c0_i32, %c0_i32_0 : i32, i32
  }
  func.func @transform_3(%arg0: i32) -> (i32, i32) {
    %c0_i32 = arith.constant 0 : i32
    %c0_i32_0 = arith.constant 0 : i32
    %c0_i32_1 = arith.constant 0 : i32
    return %c0_i32, %c0_i32_0 : i32, i32
  }
  func.func @transform_4(%arg0: i32) -> (i32, i32) {
    %c0_i32 = arith.constant 0 : i32
    %c0_i32_0 = arith.constant 0 : i32
    %c0_i32_1 = arith.constant 0 : i32
    return %c0_i32, %c0_i32_0 : i32, i32
  }
  func.func @transform_5(%arg0: i32) -> (i32, i32) {
    %c0_i32 = arith.constant 0 : i32
    %c0_i32_0 = arith.constant 0 : i32
    %c0_i32_1 = arith.constant 0 : i32
    return %c0_i32, %c0_i32_0 : i32, i32
  }
  func.func @transform_6(%arg0: i32) -> (i32, i32) {
    %c0_i32 = arith.constant 0 : i32
    %c0_i32_0 = arith.constant 0 : i32
    %c0_i32_1 = arith.constant 0 : i32
    return %c0_i32, %c0_i32_0 : i32, i32
  }
  func.func @transform_7(%arg0: i32) -> (i32, i32) {
    %c0_i32 = arith.constant 0 : i32
    %c0_i32_0 = arith.constant 0 : i32
    return %arg0, %c0_i32 : i32, i32
  }
}

</mosaic_0001>

<bundles_post_ra>
// kernel: dqn_forward.1
= control target key start
LH: loop header
LB: loop body
LE: loop exit
PB: predicated region body
PF: predicated region fallthrough
CT: control target
= control target key end

     0   :  { %s965_s24 = smov 0   ;;  %s1064_s0 = inlined_call_operand.vmem [shape: f32[256,25], index: 0, kind: input, shape index: {}]   ;;  %s1065_s1 = inlined_call_operand.vmem [shape: bf16[25,128], index: 1, kind: input, shape index: {}]   ;;  %s1066_s2 = inlined_call_operand.vmem [shape: f32[1,128], index: 2, kind: input, shape index: {}]   ;;  %s1067_s3 = inlined_call_operand.vmem [shape: bf16[128,128], index: 3, kind: input, shape index: {}]   ;;  %s1068_s4 = inlined_call_operand.vmem [shape: f32[1,128], index: 4, kind: input, shape index: {}]   ;;  %s1069_s5 = inlined_call_operand.vmem [shape: bf16[128,5], index: 5, kind: input, shape index: {}]   ;;  %s1070_s6 = inlined_call_operand.vmem [shape: f32[1,5], index: 6, kind: input, shape index: {}]   ;;  %s1071_s7 = inlined_call_operand.vmem [shape: f32[256,5], index: 7, kind: output, shape index: {}]  }
   0x1 LB: > { %s763_s25 = sadd.s32 4294967295, %s922_s24   ;;  %p767_p0 = scmp.ge.s32.totalorder %s922_s24, 1  ;;  %s922_s24 = sphi %s965_s24, %s17_s24  }
   0x2   : > { %p238_p1 = scmp.lt.s32.totalorder %s922_s24, 5 }
   0x4   : > { %p239_p2 = pnand %p767_p0, %p238_p1 }
   0x5   : > { %v898_v0 = vld [vmem:[%s1065_s1] sm:$0xff] (!%p239_p2)   ;;  %vm330_vm0 = vcmask (!%p239_p2), 1043456   ;;  %v899_v1 = vld [vmem:[%s1065_s1 + $0x8] sm:$0x1f] (!%p239_p2)   ;;  %vm331_vm1 = vcmask (!%p239_p2), 1044480   ;;  %s768_s30 = sshll.u32 (!%p239_p2), %s763_s25, 3 }
   0x6   : > { %242 = sbr.rel (%p239_p2) target bundleno = 690 (0x2b2), region = 48  ;;  %829 = vmatprep.subr.bf16.mxu0 (!%p239_p2), %v898_v0  ;;  %v924_v2 = vmov (!%p239_p2), 65535   ;;  %p271_p3 = scmp.lt.s32.totalorder (!%p239_p2), %s768_s30, 31  ;;  %v900_v4 = vld [vmem:[%s1067_s3] sm:$0xff] (!%p239_p2)   ;;  %v901_v5 = vld [vmem:[%s1067_s3 + $0x8] sm:$0xff] (!%p239_p2)   ;;  %v902_v8 = vld [vmem:[%s1067_s3 + $0x10] sm:$0xff] (!%p239_p2)  }
   0x7   : > { %830 = vmatpush3.bf16.msra.mxu0 (!%p239_p2), %v898_v0  ;;  %v332_v3 = vsel (!%p239_p2), %vm330_vm0, 4294967295, %v924_v2  ;;  %841 = vmatprep.subr.bf16.mxu1 (!%p239_p2), %v900_v4  ;;  %vm317_vm2 = vcmask (!%p239_p2), 203776   ;;  %v903_v18 = vld [vmem:[%s1067_s3 + $0x18] sm:$0xff] (!%p239_p2)   ;;  %v904_v21 = vld [vmem:[%s1067_s3 + $0x20] sm:$0xff] (!%p239_p2)   ;;  %v905_v23 = vld [vmem:[%s1067_s3 + $0x28] sm:$0xff] (!%p239_p2)   ;;  %vm698_vm3 = vcmask (!%p239_p2), 39936  }
   0x8   : > { %v333_v6 = vsel (!%p239_p2), %vm331_vm1, %v332_v3, 0  ;;  %842 = vmatpush3.bf16.msra.mxu1 (!%p239_p2), %v900_v4  ;;  %v906_v24 = vld [vmem:[%s1067_s3 + $0x30] sm:$0xff] (!%p239_p2)   ;;  %v907_v25 = vld [vmem:[%s1067_s3 + $0x38] sm:$0xff] (!%p239_p2)   ;;  %v908_v26 = vld [vmem:[%s1069_s5] sm:$0xff] (!%p239_p2)  }
   0x9   : > { %v335_v7 = vand.u32 (!%p239_p2), %v899_v1, %v333_v6  ;;  %843 = vmatprep.subr.bf16.mxu1 (!%p239_p2), %v901_v5  ;;  %v909_v27 = vld [vmem:[%s1069_s5 + $0x8] sm:$0xff] (!%p239_p2)   ;;  %v910_v28 = vld [vmem:[%s1069_s5 + $0x10] sm:$0xff] (!%p239_p2)   ;;  %v911_v29 = vld [vmem:[%s1069_s5 + $0x18] sm:$0xff] (!%p239_p2)  }
   0xa   : > { %v912_v30 = vld [vmem:[%s1069_s5 + $0x20] sm:$0xff] (!%p239_p2)   ;;  %v913_v31 = vld [vmem:[%s1069_s5 + $0x28] sm:$0xff] (!%p239_p2)   ;;  %v914_v61 = vld [vmem:[%s1069_s5 + $0x30] sm:$0xff] (!%p239_p2)  }
   0xb   : > { %831 = vmatprep.subr.bf16.mxu0 (!%p239_p2), %v335_v7  ;;  %v772_v32 = vld [vmem:[%s1066_s2] ss:$0 sm:$0xff] (!%p239_p2)  ;;  %v915_v62 = vld [vmem:[%s1069_s5 + $0x38] sm:$0xff] (!%p239_p2)  }
   0xc   : > { %832 = vmatpush3.bf16.msra.mxu0 (!%p239_p2), %v335_v7  ;;  %844 = vmatpush3.bf16.msra.mxu1 (!%p239_p2), %v901_v5  ;;  %v779_v63 = vld [vmem:[%s1068_s4] ss:$0 sm:$0xff] (!%p239_p2) }
   0xd   : > { %s1073_s30 = smov (!%p271_p3, %s768_s30), 31  ;;  %845 = vmatprep.subr.bf16.mxu1 %v902_v8  ;;  %865 = vmatprep.subr.bf16.mxu0 %v908_v26 }
   0xe   : > { %s769_s12 = sshll.u32 %s1073_s30, 3 }
   0xf   : > { %s274_s17 = scalar_lea.vmem %s1064_s0, %s769_s12  ;;  %s280_s11 = scalar_lea.vmem %s1071_s7, %s769_s12 }
  0x10   : > { %v283_v9 = vld [vmem:[%s274_s17] sm:$0xff]  ;;  %v284_v10 = vld [vmem:[%s274_s17 + $0x8] sm:$0xff]  ;;  %v285_v11 = vld [vmem:[%s274_s17 + $0x10] sm:$0xff]  ;;  %846 = vmatpush3.bf16.msra.mxu1 %v902_v8 }
  0x11   : > { %v291_v12 = vpack.c.bf16 %v284_v10, %v283_v9  ;;  %v286_v13 = vld [vmem:[%s274_s17 + $0x18] sm:$0xff]  ;;  %v287_v14 = vld [vmem:[%s274_s17 + $0x20] sm:$0xff]  ;;  %v288_v15 = vld [vmem:[%s274_s17 + $0x28] sm:$0xff]  ;;  %847 = vmatprep.subr.bf16.mxu1 %v903_v18 }
  0x12   : > { %v292_v16 = vpack.c.bf16 %v286_v13, %v285_v11  ;;  %v293_v17 = vpack.c.bf16 %v288_v15, %v287_v14  ;;  %v289_v19 = vld [vmem:[%s274_s17 + $0x30] sm:$0xff]  ;;  %v290_v20 = vld [vmem:[%s274_s17 + $0x38] sm:$0xff] }
  0x13   : > { %833 = vmatprep.mubr.msk.bf16.mxu0 %vm317_vm2, %v291_v12  ;;  %v294_v22 = vpack.c.bf16 %v290_v20, %v289_v19 }
  0x14   : > { %834 = vmatmul.mubr.msk.bf16.vlgmr.msra.gmra.mrb[0].mxu0 %vm317_vm2, %v292_v16  ;;  %848 = vmatpush3.bf16.msra.mxu1 %v903_v18 }
  0x15   : > { %837 = vmatprep.mubr.msk.bf16.mxu0 %vm317_vm2, %v293_v17  ;;  %849 = vmatprep.subr.bf16.mxu1 %v904_v21 }
  0x16   : > { %866 = vmatpush3.bf16.msra.mxu0 %v908_v26 }
  0x17   : > { %867 = vmatprep.subr.bf16.mxu0 %v909_v27 }
  0x18   : > { %850 = vmatpush3.bf16.msra.mxu1 %v904_v21 }
  0x19   : > { %851 = vmatprep.subr.bf16.mxu1 %v905_v23 }
  0x1a   : > { %868 = vmatpush3.bf16.msra.mxu0 %v909_v27 }
  0x1b   : > { %869 = vmatprep.subr.bf16.mxu0 %v910_v28 }
  0x1c   : > { %838 = vmatmul.mubr.msk.bf16.gmra.mrb[4].mxu0 %vm317_vm2, %v294_v22  ;;  %852 = vmatpush3.bf16.msra.mxu1 %v905_v23 }
  0x1d   : > { %853 = vmatprep.subr.bf16.mxu1 %v906_v24 }
  0x1e   : > { %870 = vmatpush3.bf16.msra.mxu0 %v910_v28  ;;  %v788_v28 = vld [vmem:[%s1070_s6] ss:$0 sm:$0xff] }
  0x1f   : > { %871 = vmatprep.subr.bf16.mxu0 %v911_v29 }
  0x20   : > { %854 = vmatpush3.bf16.msra.mxu1 %v906_v24 }
  0x21   : > { %855 = vmatprep.subr.bf16.mxu1 %v907_v25 }
  0x22   : > { %872 = vmatpush3.bf16.msra.mxu0 %v911_v29 }
  0x23   : > { %873 = vmatprep.subr.bf16.mxu0 %v912_v30 }
  0x24   : > { %856 = vmatpush3.bf16.msra.mxu1 %v907_v25 }
  0x26   : > { %874 = vmatpush3.bf16.msra.mxu0 %v912_v30 }
  0x27   : > { %875 = vmatprep.subr.bf16.mxu0 %v913_v31 }
  0x2a   : > { %876 = vmatpush3.bf16.msra.mxu0 %v913_v31 }
  0x2b   : > { %877 = vmatprep.subr.bf16.mxu0 %v914_v61 }
  0x2e   : > { %878 = vmatpush3.bf16.msra.mxu0 %v914_v61 }
  0x2f   : > { %879 = vmatprep.subr.bf16.mxu0 %v915_v62 }
  0x32   : > { %880 = vmatpush3.bf16.msra.mxu0 %v915_v62 }
  0xe7   : > { %v835_v33 = vpop.f32.mrb[0].mxu0 }
  0xe8   : > { %v380_v34 = vadd.f32 %v835_v33, %v772_v32  ;;  %v371_v35 = vpop.f32.mrb[1].mxu0 }
  0xe9   : > { %v372_v36 = vadd.f32 %v772_v32, %v371_v35  ;;  %v836_v37 = vpop.f32.mrb[2].mxu0 }
  0xea   : > { %v383_v38 = vadd.f32 %v836_v37, %v772_v32  ;;  %v374_v39 = vpop.f32.mrb[3].mxu0  ;;  %v404_v41 = vmax.f32 %v380_v34, 0.0 }
  0xeb   : > { %v375_v40 = vadd.f32 %v772_v32, %v374_v39  ;;  %v402_v43 = vmax.f32 %v372_v36, 0.0 }
  0xec   : > { %v405_v42 = vmax.f32 %v383_v38, 0.0 }
  0xed   : > { %v403_v44 = vmax.f32 %v375_v40, 0.0 }
  0xee   : > { %v411_v45 = vpack.c.bf16 %v405_v42, %v404_v41 }
  0xef   : > { %v839_v46 = vpop.f32.mrb[4].mxu0  ;;  %v410_v47 = vpack.c.bf16 %v403_v44, %v402_v43 }
  0xf0   : > { %v396_v48 = vadd.f32 %v839_v46, %v772_v32  ;;  %v387_v49 = vpop.f32.mrb[5].mxu0 }
  0xf1   : > { %v388_v50 = vadd.f32 %v772_v32, %v387_v49  ;;  %v840_v51 = vpop.f32.mrb[6].mxu0  ;;  %857 = vmatprep.mubr.bf16.mxu1 %v410_v47 }
  0xf2   : > { %v399_v52 = vadd.f32 %v840_v51, %v772_v32  ;;  %v390_v53 = vpop.f32.mrb[7].mxu0  ;;  %858 = vmatmul.mubr.bf16.vlgmr.msra.gmra.mrb[0].mxu1 %v411_v45  ;;  %v408_v55 = vmax.f32 %v396_v48, 0.0 }
  0xf3   : > { %v391_v54 = vadd.f32 %v772_v32, %v390_v53  ;;  %v406_v57 = vmax.f32 %v388_v50, 0.0 }
  0xf4   : > { %v409_v56 = vmax.f32 %v399_v52, 0.0 }
  0xf5   : > { %v407_v58 = vmax.f32 %v391_v54, 0.0 }
  0xf6   : > { %v413_v59 = vpack.c.bf16 %v409_v56, %v408_v55 }
  0xf7   : > { %v412_v60 = vpack.c.bf16 %v407_v58, %v406_v57 }
  0xf9   : > { %861 = vmatprep.mubr.bf16.mxu1 %v412_v60 }
  0xfa   : > { %862 = vmatmul.mubr.bf16.gmra.mrb[4].mxu1 %v413_v59 }
 0x1c5   : > { %v859_v0 = vpop.f32.mrb[0].mxu1 }
 0x1c6   : > { %v528_v1 = vadd.f32 %v859_v0, %v779_v63  ;;  %v519_v2 = vpop.f32.mrb[1].mxu1 }
 0x1c7   : > { %v520_v3 = vadd.f32 %v779_v63, %v519_v2  ;;  %v860_v4 = vpop.f32.mrb[2].mxu1 }
 0x1c8   : > { %v531_v5 = vadd.f32 %v860_v4, %v779_v63  ;;  %v522_v6 = vpop.f32.mrb[3].mxu1  ;;  %v552_v8 = vmax.f32 %v528_v1, 0.0 }
 0x1c9   : > { %v523_v7 = vadd.f32 %v779_v63, %v522_v6  ;;  %v550_v10 = vmax.f32 %v520_v3, 0.0 }
 0x1ca   : > { %v553_v9 = vmax.f32 %v531_v5, 0.0 }
 0x1cb   : > { %v551_v11 = vmax.f32 %v523_v7, 0.0 }
 0x1cc   : > { %v559_v12 = vpack.c.bf16 %v553_v9, %v552_v8 }
 0x1cd   : > { %v558_v13 = vpack.c.bf16 %v551_v11, %v550_v10  ;;  %v863_v14 = vpop.f32.mrb[4].mxu1 }
 0x1ce   : > { %v544_v15 = vadd.f32 %v863_v14, %v779_v63  ;;  %v535_v16 = vpop.f32.mrb[5].mxu1 }
 0x1cf   : > { %v536_v17 = vadd.f32 %v779_v63, %v535_v16  ;;  %v864_v18 = vpop.f32.mrb[6].mxu1  ;;  %881 = vmatprep.mubr.bf16.mxu0 %v558_v13 }
 0x1d0   : > { %v547_v19 = vadd.f32 %v864_v18, %v779_v63  ;;  %v538_v20 = vpop.f32.mrb[7].mxu1  ;;  %882 = vmatmul.mubr.bf16.vlgmr.msra.gmra.mrb[8].mxu0 %v559_v12  ;;  %v556_v22 = vmax.f32 %v544_v15, 0.0 }
 0x1d1   : > { %v539_v21 = vadd.f32 %v779_v63, %v538_v20  ;;  %v554_v24 = vmax.f32 %v536_v17, 0.0 }
 0x1d2   : > { %v557_v23 = vmax.f32 %v547_v19, 0.0 }
 0x1d3   : > { %v555_v25 = vmax.f32 %v539_v21, 0.0 }
 0x1d4   : > { %v561_v26 = vpack.c.bf16 %v557_v23, %v556_v22 }
 0x1d5   : > { %v560_v27 = vpack.c.bf16 %v555_v25, %v554_v24 }
 0x1d7   : > { %885 = vmatprep.mubr.bf16.mxu0 %v560_v27 }
 0x1d8   : > { %886 = vmatmul.mubr.bf16.gmra.mrb[12].mxu0 %v561_v26 }
 0x2a3   : > { %v883_v29 = vpop.f32.mrb[8].mxu0 }
 0x2a4   : > { %v676_v30 = vadd.f32 %v883_v29, %v788_v28  ;;  %v667_v31 = vpop.f32.mrb[9].mxu0 }
 0x2a5   : > { %v668_v32 = vadd.f32 %v788_v28, %v667_v31  ;;  %v884_v33 = vpop.f32.mrb[10].mxu0 }
 0x2a6   : > { %701 = vst.msk [vmem:[%s280_s11 + $0x10] sm:$0xff] %vm698_vm3, %v676_v30  ;;  %v679_v34 = vadd.f32 %v884_v33, %v788_v28  ;;  %v670_v35 = vpop.f32.mrb[11].mxu0 }
 0x2a7   : > { %699 = vst.msk [vmem:[%s280_s11] sm:$0xff] %vm698_vm3, %v668_v32  ;;  %v671_v36 = vadd.f32 %v788_v28, %v670_v35 }
 0x2a8   : > { %702 = vst.msk [vmem:[%s280_s11 + $0x18] sm:$0xff] %vm698_vm3, %v679_v34 }
 0x2a9   : > { %700 = vst.msk [vmem:[%s280_s11 + $0x8] sm:$0xff] %vm698_vm3, %v671_v36 }
 0x2ab   : > { %v887_v37 = vpop.f32.mrb[12].mxu0 }
 0x2ac   : > { %v692_v38 = vadd.f32 %v887_v37, %v788_v28  ;;  %v683_v39 = vpop.f32.mrb[13].mxu0 }
 0x2ad   : > { %v684_v40 = vadd.f32 %v788_v28, %v683_v39  ;;  %v888_v41 = vpop.f32.mrb[14].mxu0 }
 0x2ae   : > { %705 = vst.msk [vmem:[%s280_s11 + $0x30] sm:$0xff] %vm698_vm3, %v692_v38  ;;  %v695_v42 = vadd.f32 %v888_v41, %v788_v28  ;;  %v686_v43 = vpop.f32.mrb[15].mxu0 }
 0x2af   : > { %703 = vst.msk [vmem:[%s280_s11 + $0x20] sm:$0xff] %vm698_vm3, %v684_v40  ;;  %v687_v44 = vadd.f32 %v788_v28, %v686_v43 }
 0x2b0   : > { %706 = vst.msk [vmem:[%s280_s11 + $0x38] sm:$0xff] %vm698_vm3, %v695_v42 }
 0x2b1   : > { %704 = vst.msk [vmem:[%s280_s11 + $0x28] sm:$0xff] %vm698_vm3, %v687_v44 }
 0x2b2 PF: > { %s17_s24 = sadd.s32 1, %s922_s24  }
 0x2b3   : > { %p14_p4 = scmp.ge.s32.totalorder %s17_s24, 6  }
 0x2b5   :  { %16 = sbr.rel (!%p14_p4) target bundleno = 1 (0x1), region = 78 }

</bundles_post_ra>
